<compile_context>
chip_gen: v7x
topology: tpu7x:2x2x1
jax: 0.10.0
libtpu: 0.0.40
codegen_flags: <defaults>
</compile_context>

<pallas_src>
import functools

import jax
import jax.numpy as jnp
from jax.experimental import pallas as pl
from jax.experimental.pallas import tpu as pltpu


def _round_up(x, m):
    return (x + m - 1) // m * m


def _sigmoid_eup(z):
    # sigmoid(z) = 1 / (1 + exp(-z)).  exp and the approximate reciprocal both
    # run on the EUP slot, keeping the serial dot->activation chain off a VPU
    # divide sequence.  z is f32 (f32 accumulation + f32 bias) on every chip.
    return pl.reciprocal(1.0 + jnp.exp(-z), approx=True)


def _mcae_kernel(x_ref, p_ref, out_ref, *, P):
    dot = functools.partial(jnp.dot, preferred_element_type=jnp.float32)
    bf16 = jnp.bfloat16

    # Static, tile-aligned slices of the single fused parameter slab.
    w1 = p_ref[0 * P:2 * P, :]        # (2P, P) block-diag img/label encoder
    w2 = p_ref[2 * P:3 * P, :]        # (P, P)  total_encoder
    w3 = p_ref[3 * P:4 * P, :]        # (P, P)  total_decoder
    w4 = p_ref[4 * P:5 * P, :]        # (P, P)  block-diag img/label decoder
    b = p_ref[5 * P:5 * P + 4, :].astype(jnp.float32)   # (4, P) biases -> f32

    x = x_ref[...]                    # (1, 2P) bf16: [img | label], zero-padded

    # Layer 1: fused img/label encoders (one MXU issue, K = 2P).  Padded lanes
    # of h become sigmoid(0) = 0.5 but only multiply zero rows of w2.
    h = _sigmoid_eup(dot(x, w1) + b[0:1, :])                     # (1, P) f32
    # Layer 2: total_encoder.
    enc = _sigmoid_eup(dot(h.astype(bf16), w2) + b[1:2, :])      # (1, P) f32
    # Layer 3: total_decoder.
    dec = _sigmoid_eup(dot(enc.astype(bf16), w3) + b[2:3, :])    # (1, P) f32
    # Layer 4: fused block-diag img/label decoders -> one lane-dense slab.
    out_ref[...] = dot(dec.astype(bf16), w4) + b[3:4, :]         # (1, P) f32


def init_params(key, img_size, label_size, img_chan, label_chan, global_chan):
    """nn.Linear-style init (U(-1/sqrt(in), 1/sqrt(in))); weights stored (in, out)."""
    ks = jax.random.split(key, 12)

    def lin(kw, kb, n_in, n_out):
        bound = 1.0 / jnp.sqrt(jnp.float32(n_in))
        w = jax.random.uniform(kw, (n_in, n_out), jnp.float32, -bound, bound)
        b = jax.random.uniform(kb, (1, n_out), jnp.float32, -bound, bound)
        return w, b

    w_ie, b_ie = lin(ks[0], ks[1], img_size, img_chan)
    w_le, b_le = lin(ks[2], ks[3], label_size, label_chan)
    w_te, b_te = lin(ks[4], ks[5], img_chan + label_chan, global_chan)
    w_td, b_td = lin(ks[6], ks[7], global_chan, img_chan + label_chan)
    w_id, b_id = lin(ks[8], ks[9], img_chan, img_size)
    w_ld, b_ld = lin(ks[10], ks[11], label_chan, label_size)

    return dict(w_ie=w_ie, b_ie=b_ie, w_le=w_le, b_le=b_le,
                w_te=w_te, b_te=b_te, w_td=w_td, b_td=b_td,
                w_id=w_id, b_id=b_id, w_ld=w_ld, b_ld=b_ld)


def fuse_params(params, img_size, label_size, img_chan, label_chan, global_chan):
    """Build ONE padded/fused bf16 parameter slab (weights + biases).

    Done once, outside the kernel.  All dims padded to a common lane-dense
    width P (multiple of 128) so every matmul runs on clean tiles with no
    masked partial loads/stores.
    """
    c_sum = img_chan + label_chan
    d_out = img_size + label_size
    P = _round_up(max(img_size, label_size, c_sum, global_chan, d_out), 128)

    # Layer 1: rows [0,P) feed from the padded img lanes, rows [P,2P) from the
    # padded label lanes; block-diag output columns [0,img_chan)/[img_chan,c_sum).
    w1 = jnp.zeros((2 * P, P), jnp.float32)
    w1 = w1.at[:img_size, :img_chan].set(params["w_ie"])
    w1 = w1.at[P:P + label_size, img_chan:c_sum].set(params["w_le"])

    w2 = jnp.zeros((P, P), jnp.float32).at[:c_sum, :global_chan].set(params["w_te"])
    w3 = jnp.zeros((P, P), jnp.float32).at[:global_chan, :c_sum].set(params["w_td"])

    w4 = jnp.zeros((P, P), jnp.float32)
    w4 = w4.at[:img_chan, :img_size].set(params["w_id"])
    w4 = w4.at[img_chan:c_sum, img_size:d_out].set(params["w_ld"])

    # Biases as 4 extra rows of the same slab (bf16 in HBM, upcast to f32 in
    # the kernel before the adds).  Padded to 16 rows = one full bf16 sublane
    # tile so the whole slab stays tile-aligned.
    b = jnp.zeros((16, P), jnp.float32)
    b = b.at[0, :img_chan].set(params["b_ie"][0])
    b = b.at[0, img_chan:c_sum].set(params["b_le"][0])
    b = b.at[1, :global_chan].set(params["b_te"][0])
    b = b.at[2, :c_sum].set(params["b_td"][0])
    b = b.at[3, :img_size].set(params["b_id"][0])
    b = b.at[3, img_size:d_out].set(params["b_ld"][0])

    slab = jnp.concatenate([w1, w2, w3, w4, b], axis=0).astype(jnp.bfloat16)

    return {"params": slab, "P": P,
            "img_size": img_size, "label_size": label_size,
            "c_sum": c_sum, "d_out": d_out}


def mc_autoencoder_forward(img, label, fused):
    """img: (B, img_size), label: (B, label_size) f32.  Returns
    (img_logits, label_logits) of shapes (img_size,), (label_size,) — exactly
    the PyTorch module's outputs (only batch row 0 feeds the bottleneck)."""
    P = fused["P"]
    img_size = fused["img_size"]
    label_size = fused["label_size"]

    # Single lane-dense bf16 input row: lanes [0,P) = img[0] zero-padded,
    # lanes [P,2P) = label[0] zero-padded.  pad+pad+concat+cast is one tiny
    # XLA fusion (no dynamic-update-slice prologue).
    img_p = jnp.pad(img[:1], ((0, 0), (0, P - img_size)))
    lab_p = jnp.pad(label[:1], ((0, 0), (0, P - label_size)))
    x = jnp.concatenate([img_p, lab_p], axis=1).astype(jnp.bfloat16)   # (1, 2P)

    slab = fused["params"]
    flops = 2 * (2 * P) * P + 3 * 2 * P * P
    transcendentals = 6 * P                      # 3x exp + 3x reciprocal
    bytes_accessed = slab.size * 2 + x.size * 2 + P * 4

    vmem = pl.BlockSpec(memory_space=pltpu.MemorySpace.VMEM)
    out = pl.pallas_call(
        functools.partial(_mcae_kernel, P=P),
        out_shape=jax.ShapeDtypeStruct((1, P), jnp.float32),
        in_specs=[vmem, vmem],
        out_specs=vmem,
        cost_estimate=pl.CostEstimate(
            flops=flops,
            transcendentals=transcendentals,
            bytes_accessed=bytes_accessed,
        ),
        # TODO(synk): if many independent forwards are needed per step, add a
        # leading grid axis over work items with index_map `lambda i: (0, 0)`
        # for the parameter slab (weights stay VMEM-resident across steps),
        # batch rows into the LHS of each dot, and mark the axis "parallel"
        # (pltpu.CompilerParams(dimension_semantics=("parallel",))) so v7x
        # shards it across both TensorCores.  A single forward of this module
        # has no batch-parallel work (only row 0 feeds the bottleneck).
    )(x, slab)

    return out[0, :img_size], out[0, img_size:img_size + label_size]


def reference_forward_f32(img, label, params, img_chan):
    """Pure-f32 mirror of the PyTorch forward (unfused, unpadded)."""
    sig = jax.nn.sigmoid
    h_img = sig(img @ params["w_ie"] + params["b_ie"])
    h_lab = sig(label @ params["w_le"] + params["b_le"])
    enc_in = jnp.concatenate([h_img[0], h_lab[0]])[None, :]
    enc = sig(enc_in @ params["w_te"] + params["b_te"])
    dec = sig(enc @ params["w_td"] + params["b_td"])
    dec_i, dec_l = dec[:, :img_chan], dec[:, img_chan:]
    img_logits = dec_i @ params["w_id"] + params["b_id"]
    lab_logits = dec_l @ params["w_ld"] + params["b_ld"]
    return img_logits[0], lab_logits[0]


def reference_forward_fused(img, label, fused):
    """Pure-JAX mirror of the kernel's numerics (same bf16 slab, same padded
    layout, f32 accumulation).  The only difference vs. the kernel is an exact
    sigmoid instead of the EUP approximate reciprocal."""
    P = fused["P"]
    img_size = fused["img_size"]
    label_size = fused["label_size"]
    slab = fused["params"]

    w1 = slab[0:2 * P]
    w2 = slab[2 * P:3 * P]
    w3 = slab[3 * P:4 * P]
    w4 = slab[4 * P:5 * P]
    b = slab[5 * P:5 * P + 4].astype(jnp.float32)

    img_p = jnp.pad(img[:1], ((0, 0), (0, P - img_size)))
    lab_p = jnp.pad(label[:1], ((0, 0), (0, P - label_size)))
    x = jnp.concatenate([img_p, lab_p], axis=1).astype(jnp.bfloat16)

    dot = functools.partial(jnp.dot, preferred_element_type=jnp.float32)
    sig = jax.nn.sigmoid
    bf16 = jnp.bfloat16

    h = sig(dot(x, w1) + b[0:1])
    enc = sig(dot(h.astype(bf16), w2) + b[1:2])
    dec = sig(dot(enc.astype(bf16), w3) + b[2:3])
    out = dot(dec.astype(bf16), w4) + b[3:4]
    return out[0, :img_size], out[0, img_size:img_size + label_size]


if __name__ == "__main__":
    # Small shapes consistent with the module's constructor arguments.
    batch = 2
    img_size, label_size = 64, 10
    img_chan, label_chan, global_chan = 32, 10, 24

    key = jax.random.PRNGKey(0)
    k_img, k_lab, k_par = jax.random.split(key, 3)

    img = jax.random.uniform(k_img, (batch, img_size), jnp.float32)
    label = jax.nn.one_hot(
        jax.random.randint(k_lab, (batch,), 0, label_size), label_size
    ).astype(jnp.float32)

    params = init_params(k_par, img_size, label_size, img_chan, label_chan,
                         global_chan)
    fused = fuse_params(params, img_size, label_size, img_chan, label_chan,
                        global_chan)

    img_logits, lab_logits = mc_autoencoder_forward(img, label, fused)
    jax.block_until_ready((img_logits, lab_logits))

    assert img_logits.shape == (img_size,)
    assert lab_logits.shape == (label_size,)

    # Check 1: kernel vs. pure-JAX mirror of the same fused bf16 numerics
    # (difference is only the EUP approximate reciprocal in the sigmoids).
    ref_i_f, ref_l_f = reference_forward_fused(img, label, fused)
    assert jnp.allclose(img_logits, ref_i_f, atol=2e-2, rtol=2e-2), (
        jnp.max(jnp.abs(img_logits - ref_i_f)))
    assert jnp.allclose(lab_logits, ref_l_f, atol=2e-2, rtol=2e-2), (
        jnp.max(jnp.abs(lab_logits - ref_l_f)))

    # Check 2 (looser): vs. the full-f32 PyTorch-style forward; difference is
    # bf16 rounding of weights/biases/activations + the approximate reciprocal.
    ref_i, ref_l = reference_forward_f32(img, label, params, img_chan)
    assert jnp.allclose(img_logits, ref_i, atol=6e-2, rtol=6e-2), (
        jnp.max(jnp.abs(img_logits - ref_i)))
    assert jnp.allclose(lab_logits, ref_l, atol=6e-2, rtol=6e-2), (
        jnp.max(jnp.abs(lab_logits - ref_l)))

    print("KERNEL_OK")
</pallas_src>

<mosaic_0001>
module attributes {stable_mosaic.version = 11 : i64} {
  func.func @_mcae_kernel(%arg0: memref<1x256xbf16, #tpu.memory_space<vmem>>, %arg1: memref<656x128xbf16, #tpu.memory_space<vmem>>, %arg2: memref<1x128xf32, #tpu.memory_space<vmem>>) attributes {dimension_semantics = [], scalar_prefetch = 0 : i64, scratch_operands = 0 : i64, tpu.core_type = #tpu.core_type<tc>} {
    %c0 = arith.constant 0 : index
    %c0_0 = arith.constant 0 : index
    %0 = vector.load %arg1[%c0, %c0_0] : memref<656x128xbf16, #tpu.memory_space<vmem>>, vector<256x128xbf16>
    %c256 = arith.constant 256 : index
    %c0_1 = arith.constant 0 : index
    %1 = vector.load %arg1[%c256, %c0_1] : memref<656x128xbf16, #tpu.memory_space<vmem>>, vector<128x128xbf16>
    %c384 = arith.constant 384 : index
    %c0_2 = arith.constant 0 : index
    %2 = vector.load %arg1[%c384, %c0_2] : memref<656x128xbf16, #tpu.memory_space<vmem>>, vector<128x128xbf16>
    %c512 = arith.constant 512 : index
    %c0_3 = arith.constant 0 : index
    %3 = vector.load %arg1[%c512, %c0_3] : memref<656x128xbf16, #tpu.memory_space<vmem>>, vector<128x128xbf16>
    %c640 = arith.constant 640 : index
    %c0_4 = arith.constant 0 : index
    %4 = vector.load %arg1[%c640, %c0_4] : memref<656x128xbf16, #tpu.memory_space<vmem>>, vector<4x128xbf16>
    %5 = arith.extf %4 : vector<4x128xbf16> to vector<4x128xf32>
    %c0_5 = arith.constant 0 : index
    %c0_6 = arith.constant 0 : index
    %6 = vector.load %arg0[%c0_5, %c0_6] : memref<1x256xbf16, #tpu.memory_space<vmem>>, vector<1x256xbf16>
    %cst = arith.constant dense<0.000000e+00> : vector<1x128xf32>
    %7 = tpu.matmul %6, %0, %cst {dimension_numbers = #tpu.dot_dimension_numbers<[1], [0], [0], [1], [0, 0, 1, 1], [], []>} : vector<1x256xbf16>, vector<256x128xbf16>, vector<1x128xf32> -> vector<1x128xf32>
    %8 = vector.extract_strided_slice %5 {offsets = [0, 0], sizes = [1, 128], strides = [1, 1]} : vector<4x128xf32> to vector<1x128xf32>
    %9 = arith.addf %7, %8 : vector<1x128xf32>
    %cst_7 = arith.constant 0.000000e+00 : f32
    %10 = vector.broadcast %cst_7 : f32 to vector<1x128xf32>
    %11 = arith.subf %10, %9 : vector<1x128xf32>
    %12 = math.exp %11 : vector<1x128xf32>
    %cst_8 = arith.constant 1.000000e+00 : f32
    %13 = vector.broadcast %cst_8 : f32 to vector<1x128xf32>
    %14 = arith.addf %13, %12 : vector<1x128xf32>
    %15 = tpu.reciprocal %14 {approx = true} : vector<1x128xf32> -> vector<1x128xf32>
    %16 = arith.truncf %15 : vector<1x128xf32> to vector<1x128xbf16>
    %cst_9 = arith.constant dense<0.000000e+00> : vector<1x128xf32>
    %17 = tpu.matmul %16, %1, %cst_9 {dimension_numbers = #tpu.dot_dimension_numbers<[1], [0], [0], [1], [0, 0, 1, 1], [], []>} : vector<1x128xbf16>, vector<128x128xbf16>, vector<1x128xf32> -> vector<1x128xf32>
    %18 = vector.extract_strided_slice %5 {offsets = [1, 0], sizes = [1, 128], strides = [1, 1]} : vector<4x128xf32> to vector<1x128xf32>
    %19 = arith.addf %17, %18 : vector<1x128xf32>
    %cst_10 = arith.constant 0.000000e+00 : f32
    %20 = vector.broadcast %cst_10 : f32 to vector<1x128xf32>
    %21 = arith.subf %20, %19 : vector<1x128xf32>
    %22 = math.exp %21 : vector<1x128xf32>
    %cst_11 = arith.constant 1.000000e+00 : f32
    %23 = vector.broadcast %cst_11 : f32 to vector<1x128xf32>
    %24 = arith.addf %23, %22 : vector<1x128xf32>
    %25 = tpu.reciprocal %24 {approx = true} : vector<1x128xf32> -> vector<1x128xf32>
    %26 = arith.truncf %25 : vector<1x128xf32> to vector<1x128xbf16>
    %cst_12 = arith.constant dense<0.000000e+00> : vector<1x128xf32>
    %27 = tpu.matmul %26, %2, %cst_12 {dimension_numbers = #tpu.dot_dimension_numbers<[1], [0], [0], [1], [0, 0, 1, 1], [], []>} : vector<1x128xbf16>, vector<128x128xbf16>, vector<1x128xf32> -> vector<1x128xf32>
    %28 = vector.extract_strided_slice %5 {offsets = [2, 0], sizes = [1, 128], strides = [1, 1]} : vector<4x128xf32> to vector<1x128xf32>
    %29 = arith.addf %27, %28 : vector<1x128xf32>
    %cst_13 = arith.constant 0.000000e+00 : f32
    %30 = vector.broadcast %cst_13 : f32 to vector<1x128xf32>
    %31 = arith.subf %30, %29 : vector<1x128xf32>
    %32 = math.exp %31 : vector<1x128xf32>
    %cst_14 = arith.constant 1.000000e+00 : f32
    %33 = vector.broadcast %cst_14 : f32 to vector<1x128xf32>
    %34 = arith.addf %33, %32 : vector<1x128xf32>
    %35 = tpu.reciprocal %34 {approx = true} : vector<1x128xf32> -> vector<1x128xf32>
    %36 = arith.truncf %35 : vector<1x128xf32> to vector<1x128xbf16>
    %cst_15 = arith.constant dense<0.000000e+00> : vector<1x128xf32>
    %37 = tpu.matmul %36, %3, %cst_15 {dimension_numbers = #tpu.dot_dimension_numbers<[1], [0], [0], [1], [0, 0, 1, 1], [], []>} : vector<1x128xbf16>, vector<128x128xbf16>, vector<1x128xf32> -> vector<1x128xf32>
    %38 = vector.extract_strided_slice %5 {offsets = [3, 0], sizes = [1, 128], strides = [1, 1]} : vector<4x128xf32> to vector<1x128xf32>
    %39 = arith.addf %37, %38 : vector<1x128xf32>
    %c0_16 = arith.constant 0 : index
    %c0_17 = arith.constant 0 : index
    %40 = vector.load %arg2[%c0_16, %c0_17] : memref<1x128xf32, #tpu.memory_space<vmem>>, vector<1x128xf32>
    tpu.vector_store %arg2[%c0_16, %c0_17], %39 {strides = array<i32>} : memref<1x128xf32, #tpu.memory_space<vmem>>, vector<1x128xf32>,
    return
  }
}

</mosaic_0001>

<bundles_post_ra>
// kernel: tpu_custom_call.1
= control target key start
LH: loop header
LB: loop body
LE: loop exit
PB: predicated region body
PF: predicated region fallthrough
CT: control target
= control target key end

     0   :  { %7 = vsyncpa [#allocation3], 0  ;;  %s973_s0 = inlined_call_operand.hbm [shape: bf16[1,256], index: 0, kind: input, shape index: {}]   ;;  %s974_s1 = inlined_call_operand.hbm [shape: bf16[656,128], index: 1, kind: input, shape index: {}]   ;;  %s975_s2 = inlined_call_operand.hbm [shape: f32[1,128], index: 2, kind: output, shape index: {}]  }
   0x1   :  { %8 = vsyncpa [#allocation6], 0 }
   0x2   :  { %9 = vsyncpa [#allocation4], 0  ;;  %s871_s9 = smov [#allocation2]   ;;  %s872_s11 = smov [#allocation5]  }
   0x3   :  { %s16_s10 = sshll.u32 %s871_s9, 4  ;;  %s25_s12 = sshll.u32 %s872_s11, 4  ;;  %s17_s10 = int_to_ptr.vmem [resolvable:$true] %s16_s10  ;;  %s894_s12 = int_to_ptr.vmem [resolvable:$true] %s25_s12 }
   0x4   :  { %s799_s15 = scalar_lea.hbm %s973_s0, 32 }
   0x5   :  { %p800_p0 = scmp.ne.s32.totalorder %s973_s0, %s799_s15  ;;  %p803_p1 = scmp.lt.u32.totalorder %s799_s15, %s973_s0 }
   0x7   :  { %p805_p2 = pnand %p803_p1, %p800_p0 }
   0x9   :  { %808 = shalt.err (!%p805_p2)
}
   0xa   :  { %s809_s20 = scalar_lea.vmem %s17_s10, 32  ;;  %p814_p4 = scmp.lt.s32.totalorder %s17_s10, %s17_s10 }
   0xb   :  { %p810_p3 = scmp.ne.s32.totalorder %s17_s10, %s809_s20  ;;  %p815_p5 = scmp.lt.s32.totalorder %s809_s20, %s809_s20 }
   0xd   :  { %p816_p6 = por %p815_p5, %p814_p4 }
   0xf   :  { %p817_p7 = pnand %p816_p6, %p810_p3 }
  0x11   :  { %820 = shalt.err (!%p817_p7)
}
  0x12   :  { %19 = dma.hbm_to_vmem [thread:$0]  %s973_s0, 32, %s17_s10, [#allocation3]  }
  0x13   :  { %s821_s25 = scalar_lea.hbm %s974_s1, 5248 }
  0x14   :  { %p822_p8 = scmp.ne.s32.totalorder %s974_s1, %s821_s25  ;;  %p825_p9 = scmp.lt.u32.totalorder %s821_s25, %s974_s1 }
  0x16   :  { %p827_p10 = pnand %p825_p9, %p822_p8 }
  0x18   :  { %830 = shalt.err (!%p827_p10)
}
  0x19   :  { %s831_s30 = scalar_lea.vmem %s894_s12, 5248  ;;  %p836_p12 = scmp.lt.s32.totalorder %s894_s12, %s894_s12 }
  0x1a   :  { %p832_p11 = scmp.ne.s32.totalorder %s894_s12, %s831_s30  ;;  %p837_p13 = scmp.lt.s32.totalorder %s831_s30, %s831_s30 }
  0x1c   :  { %p838_p0 = por %p837_p13, %p836_p12 }
  0x1e   :  { %p839_p1 = pnand %p838_p0, %p832_p11 }
  0x20   :  { %842 = shalt.err (!%p839_p1)
}
  0x21   :  { %s873_s0 = smov 64   ;;  %s874_s3 = smov 4  }
  0x22   :  { %31 = dma.hbm_to_vmem [thread:$0]  %s974_s1, 5248, %s894_s12, [#allocation6], %s873_s0, %s873_s0, %s874_s3  }
  0x23   :  { %865 = dma.done.wait [#allocation3], 32  }
  0x24   :  { %866 = vsyncadd [#allocation3], 4294967264 }
  0x25   :  { %867 = dma.done.wait [#allocation6], 5248  }
  0x26   :  { %868 = vsyncadd [#allocation6], 4294962048  ;;  %v747_v0 = vld [vmem:[#allocation5 + $0x40] sm:$0xff]   ;;  %v749_v2 = vld [vmem:[#allocation5 + $0x48] sm:$0xff]   ;;  %v875_v6 = vmov 1966171168   ;;  %v134_v8 = vlaneseq }
  0x27   :  { %v748_v1 = vld [vmem:[#allocation5] sm:$0xff]   ;;  %630 = vmatprep.subr.bf16.mxu0 %v747_v0  ;;  %v750_v3 = vld [vmem:[#allocation5 + $0x8] sm:$0xff]   ;;  %v751_v4 = vld [vmem:[#allocation5 + $0x50] sm:$0xff]   ;;  %v132_v7 = vunpack.c.l.s4 %v875_v6  ;;  %v876_v27 = vmov 0.0   ;;  %vm877_vm0 = vmmov 0   ;;  %s878_s1 = smov [#allocation7]  }
  0x28   :  { %631 = vmatpush3.bf16.msra.mxu0 %v748_v1  ;;  %v752_v5 = vld [vmem:[#allocation5 + $0x10] sm:$0xff]   ;;  %v753_v9 = vld [vmem:[#allocation5 + $0x58] sm:$0xff]   ;;  %v135_v12 = vshrl.u32 %v134_v8, 7  ;;  %v755_v13 = vld [vmem:[#allocation5 + $0x60] sm:$0xff]   ;;  %679 = vmatprep.subr.bf16.mxu1 %v876_v27  ;;  %s579_s6 = sshll.u32 %s878_s1, 4  ;;  %s580_s6 = int_to_ptr.vmem [resolvable:$true] %s579_s6 }
  0x29   :  { %632 = vmatprep.subr.bf16.mxu0 %v749_v2  ;;  %v754_v10 = vld [vmem:[#allocation5 + $0x18] sm:$0xff]   ;;  %v133_v11 = vunpack.c.0.s8 %v132_v7  ;;  %v756_v14 = vld [vmem:[#allocation5 + $0x20] sm:$0xff]   ;;  %v757_v15 = vld [vmem:[#allocation5 + $0x68] sm:$0xff]   ;;  %695 = vmatprep.mubr.msk.bf16.mxu1 %vm877_vm0, %v876_v27  ;;  %s843_s7 = scalar_lea.vmem %s580_s6, 16  ;;  %s847_s8 = scalar_lea.vmem %s580_s6, 32 }
  0x2a   :  { %v589_v17 = vld.sshfl [vmem:[#allocation2] sm:$0x11 pattern:$0x75316420]  ;;  %v758_v18 = vld [vmem:[#allocation5 + $0x28] sm:$0xff]   ;;  %v759_v20 = vld [vmem:[#allocation5 + $0x70] sm:$0xff]   ;;  %p844_p2 = scmp.ne.s32.totalorder %s580_s6, %s843_s7  ;;  %p848_p3 = scmp.lt.s32.totalorder %s580_s6, %s580_s6 }
  0x2b   :  { %v136_v16 = vsub.s32 %v133_v11, %v135_v12  ;;  %v130_v19 = vcombine.high %v589_v17, %v589_v17  ;;  %v760_v22 = vld [vmem:[#allocation5 + $0x30] sm:$0xff]   ;;  %v761_v23 = vld [vmem:[#allocation5 + $0x78] sm:$0xff]   ;;  %v763_v26 = vld [vmem:[#allocation5 + $0x80] sm:$0xff]   ;;  %p849_p4 = scmp.lt.s32.totalorder %s847_s8, %s843_s7 }
  0x2c   :  { %633 = vmatpush3.bf16.msra.mxu0 %v750_v3  ;;  %v762_v24 = vld [vmem:[#allocation5 + $0x38] sm:$0xff]   ;;  %680 = vmatpush3.bf16.msra.mxu1 %v763_v26  ;;  %v764_v28 = vld [vmem:[#allocation5 + $0x88] sm:$0xff]   ;;  %v765_v29 = vld [vmem:[#allocation5 + $0x90] sm:$0xff]  }
  0x2d   :  { %634 = vmatprep.subr.bf16.mxu0 %v751_v4  ;;  %v144_v21 = vrot.slane %v130_v19, %v136_v16  ;;  %v137_v25 = vrot.slane %v589_v17, %v136_v16  ;;  %681 = vmatprep.subr.bf16.mxu1 %v876_v27  ;;  %v766_v30 = vld [vmem:[#allocation5 + $0x98] sm:$0xff]   ;;  %v767_v31 = vld [vmem:[#allocation5 + $0xa0] sm:$0xff]   ;;  %v768_v32 = vld [vmem:[#allocation5 + $0xa8] sm:$0xff]   ;;  %p850_p5 = por %p849_p4, %p848_p3 }
  0x2e   :  { %v769_v33 = vld [vmem:[#allocation5 + $0xb0] sm:$0xff]   ;;  %v770_v34 = vld [vmem:[#allocation5 + $0xb8] sm:$0xff]   ;;  %v119_v35 = vld [vmem:[#allocation5 + $0x140] sm:$0x3] }
  0x2f   :  { %275 = vmatprep.mubr.bf16.mxu0 %v144_v21  ;;  %v939_v37 = vunpack.c.l.bf16 %v119_v35  ;;  %v771_v49 = vld [vmem:[#allocation5 + $0xc0] sm:$0xff]   ;;  %v772_v50 = vld [vmem:[#allocation5 + $0xc8] sm:$0xff]   ;;  %v773_v51 = vld [vmem:[#allocation5 + $0xd0] sm:$0xff]   ;;  %p851_p6 = pnand %p850_p5, %p844_p2 }
  0x30   :  { %635 = vmatpush3.bf16.msra.mxu0 %v752_v5  ;;  %682 = vmatpush3.bf16.msra.mxu1 %v764_v28  ;;  %v774_v52 = vld [vmem:[#allocation5 + $0xd8] sm:$0xff]   ;;  %v775_v53 = vld [vmem:[#allocation5 + $0xe0] sm:$0xff]   ;;  %v776_v54 = vld [vmem:[#allocation5 + $0xe8] sm:$0xff]  }
  0x31   :  { %636 = vmatprep.subr.bf16.mxu0 %v753_v9  ;;  %683 = vmatprep.subr.bf16.mxu1 %v876_v27  ;;  %v777_v55 = vld [vmem:[#allocation5 + $0xf0] sm:$0xff]   ;;  %v778_v56 = vld [vmem:[#allocation5 + $0xf8] sm:$0xff]   ;;  %v338_v57 = vrot.slane %v939_v37, 1  ;;  %v779_v5 = vld [vmem:[#allocation5 + $0x100] sm:$0xff]  }
  0x32   :  { %v780_v6 = vld [vmem:[#allocation5 + $0x108] sm:$0xff]   ;;  %v781_v7 = vld [vmem:[#allocation5 + $0x110] sm:$0xff]   ;;  %v782_v8 = vld [vmem:[#allocation5 + $0x118] sm:$0xff]  }
  0x33   :  { %v783_v9 = vld [vmem:[#allocation5 + $0x120] sm:$0xff]   ;;  %v785_v11 = vld [vmem:[#allocation5 + $0x130] sm:$0xff]   ;;  %v786_v12 = vld [vmem:[#allocation5 + $0x138] sm:$0xff]  }
  0x34   :  { %637 = vmatpush3.bf16.msra.mxu0 %v754_v10  ;;  %684 = vmatpush3.bf16.msra.mxu1 %v765_v29  ;;  %v784_v10 = vld [vmem:[#allocation5 + $0x128] sm:$0xff]  }
  0x35   :  { %638 = vmatprep.subr.bf16.mxu0 %v755_v13  ;;  %685 = vmatprep.subr.bf16.mxu1 %v876_v27  ;;  %v434_v13 = vrot.slane %v939_v37, 2 }
  0x38   :  { %639 = vmatpush3.bf16.msra.mxu0 %v756_v14  ;;  %686 = vmatpush3.bf16.msra.mxu1 %v766_v30 }
  0x39   :  { %640 = vmatprep.subr.bf16.mxu0 %v757_v15  ;;  %687 = vmatprep.subr.bf16.mxu1 %v876_v27 }
  0x3c   :  { %641 = vmatpush3.bf16.msra.mxu0 %v758_v18  ;;  %688 = vmatpush3.bf16.msra.mxu1 %v767_v31 }
  0x3d   :  { %642 = vmatprep.subr.bf16.mxu0 %v759_v20  ;;  %689 = vmatprep.subr.bf16.mxu1 %v876_v27 }
  0x40   :  { %643 = vmatpush3.bf16.msra.mxu0 %v760_v22  ;;  %690 = vmatpush3.bf16.msra.mxu1 %v768_v32 }
  0x41   :  { %644 = vmatprep.subr.bf16.mxu0 %v761_v23  ;;  %691 = vmatprep.subr.bf16.mxu1 %v876_v27 }
  0x44   :  { %645 = vmatpush3.bf16.msra.mxu0 %v762_v24  ;;  %692 = vmatpush3.bf16.msra.mxu1 %v769_v33 }
  0x45   :  { %699 = vmatprep.subr.bf16.mxu0 %v876_v27  ;;  %693 = vmatprep.subr.bf16.mxu1 %v876_v27 }
  0x47   :  { %276 = vmatmul.mubr.bf16.vlgmr.msra.gmra.mrb[0].mxu0 %v137_v25  ;;  %v530_v25 = vrot.slane %v939_v37, 3 }
  0x48   :  { %715 = vmatprep.mubr.msk.bf16.mxu0 %vm877_vm0, %v876_v27  ;;  %694 = vmatpush3.bf16.msra.mxu1 %v770_v34 }
  0x49   :  { %719 = vmatprep.subr.bf16.mxu1 %v876_v27  ;;  %700 = vmatpush3.bf16.msra.mxu0 %v771_v49 }
  0x4a   :  { %701 = vmatprep.subr.bf16.mxu0 %v876_v27 }
  0x4d   :  { %702 = vmatpush3.bf16.msra.mxu0 %v772_v50 }
  0x4e   :  { %703 = vmatprep.subr.bf16.mxu0 %v876_v27 }
  0x51   :  { %704 = vmatpush3.bf16.msra.mxu0 %v773_v51 }
  0x52   :  { %705 = vmatprep.subr.bf16.mxu0 %v876_v27 }
  0x55   :  { %706 = vmatpush3.bf16.msra.mxu0 %v774_v52 }
  0x56   :  { %707 = vmatprep.subr.bf16.mxu0 %v876_v27 }
  0x59   :  { %708 = vmatpush3.bf16.msra.mxu0 %v775_v53 }
  0x5a   :  { %709 = vmatprep.subr.bf16.mxu0 %v876_v27 }
  0x5d   :  { %710 = vmatpush3.bf16.msra.mxu0 %v776_v54 }
  0x5e   :  { %711 = vmatprep.subr.bf16.mxu0 %v876_v27 }
  0x61   :  { %712 = vmatpush3.bf16.msra.mxu0 %v777_v55 }
  0x62   :  { %713 = vmatprep.subr.bf16.mxu0 %v876_v27 }
  0x65   :  { %714 = vmatpush3.bf16.msra.mxu0 %v778_v56 }
 0x11a   :  { %v646_v36 = vpop.f32.mrb[0].mxu0 }
 0x11b   :  { %v647_v38 = vpop.f32.mrb[1].mxu0 }
 0x11c   :  { %v648_v39 = vadd.f32 %v647_v38, %v646_v36  ;;  %v649_v40 = vpop.f32.mrb[2].mxu0 }
 0x11d   :  { %v650_v41 = vpop.f32.mrb[3].mxu0 }
 0x11e   :  { %v278_v42 = vadd.f32 %v648_v39, %v939_v37 }
 0x120   :  { %v283_v43 = vsub.f32 0.0, %v278_v42 }
 0x122   :  { %v284_v44 = vmul.f32 1.442695, %v283_v43 }
 0x124   :  { %787 = vpow2.f32 %v284_v44 }
 0x12e   :  { %v788_v45 = vpop.eup %787 }
 0x12f   :  { %v286_v46 = vadd.f32 1.0, %v788_v45 }
 0x131   :  { %789 = vrcp.f32 %v286_v46 }
 0x13b   :  { %v790_v47 = vpop.eup %789 }
 0x13c   :  { %v288_v48 = vpack.c.bf16 %v790_v47, %v790_v47 }
 0x13e   :  { %696 = vmatmul.mubr.bf16.vlgmr.msra.gmra.mrb[0].mxu1 %v288_v48 }
 0x13f   :  { %735 = vmatprep.mubr.msk.bf16.mxu1 %vm877_vm0, %v876_v27  ;;  %720 = vmatpush3.bf16.msra.mxu1 %v779_v5 }
 0x140   :  { %721 = vmatprep.subr.bf16.mxu1 %v876_v27 }
 0x143   :  { %722 = vmatpush3.bf16.msra.mxu1 %v780_v6 }
 0x144   :  { %723 = vmatprep.subr.bf16.mxu1 %v876_v27 }
 0x147   :  { %724 = vmatpush3.bf16.msra.mxu1 %v781_v7 }
 0x148   :  { %725 = vmatprep.subr.bf16.mxu1 %v876_v27 }
 0x14b   :  { %726 = vmatpush3.bf16.msra.mxu1 %v782_v8 }
 0x14c   :  { %727 = vmatprep.subr.bf16.mxu1 %v876_v27 }
 0x14f   :  { %728 = vmatpush3.bf16.msra.mxu1 %v783_v9 }
 0x150   :  { %729 = vmatprep.subr.bf16.mxu1 %v876_v27 }
 0x153   :  { %730 = vmatpush3.bf16.msra.mxu1 %v784_v10 }
 0x154   :  { %731 = vmatprep.subr.bf16.mxu1 %v876_v27 }
 0x157   :  { %732 = vmatpush3.bf16.msra.mxu1 %v785_v11 }
 0x158   :  { %733 = vmatprep.subr.bf16.mxu1 %v876_v27 }
 0x15b   :  { %734 = vmatpush3.bf16.msra.mxu1 %v786_v12 }
 0x211   :  { %v374_v58 = vpop.f32.mrb[0].mxu1 }
 0x212   :  { %v375_v59 = vadd.f32 %v374_v58, %v338_v57  ;;  %v697_v60 = vpop.f32.mrb[1].mxu1 }
 0x213   :  { %v377_v61 = vpop.f32.mrb[2].mxu1 }
 0x214   :  { %v380_v62 = vsub.f32 0.0, %v375_v59  ;;  %v698_v63 = vpop.f32.mrb[3].mxu1 }
 0x216   :  { %v381_v0 = vmul.f32 1.442695, %v380_v62 }
 0x218   :  { %791 = vpow2.f32 %v381_v0 }
 0x222   :  { %v792_v1 = vpop.eup %791 }
 0x223   :  { %v383_v2 = vadd.f32 1.0, %v792_v1 }
 0x225   :  { %793 = vrcp.f32 %v383_v2 }
 0x22f   :  { %v794_v3 = vpop.eup %793 }
 0x230   :  { %v385_v4 = vpack.c.bf16 %v794_v3, %v794_v3 }
 0x232   :  { %716 = vmatmul.mubr.bf16.vlgmr.msra.gmra.mrb[4].mxu0 %v385_v4 }
 0x305   :  { %v470_v14 = vpop.f32.mrb[4].mxu0 }
 0x306   :  { %v471_v15 = vadd.f32 %v470_v14, %v434_v13  ;;  %v717_v16 = vpop.f32.mrb[5].mxu0 }
 0x307   :  { %v473_v17 = vpop.f32.mrb[6].mxu0 }
 0x308   :  { %v476_v18 = vsub.f32 0.0, %v471_v15  ;;  %v718_v19 = vpop.f32.mrb[7].mxu0 }
 0x30a   :  { %v477_v20 = vmul.f32 1.442695, %v476_v18 }
 0x30c   :  { %795 = vpow2.f32 %v477_v20 }
 0x316   :  { %v796_v21 = vpop.eup %795 }
 0x317   :  { %v479_v22 = vadd.f32 1.0, %v796_v21 }
 0x319   :  { %797 = vrcp.f32 %v479_v22 }
 0x323   :  { %v798_v23 = vpop.eup %797 }
 0x324   :  { %v481_v24 = vpack.c.bf16 %v798_v23, %v798_v23 }
 0x326   :  { %736 = vmatmul.mubr.bf16.vlgmr.msra.gmra.mrb[4].mxu1 %v481_v24 }
 0x3f9   :  { %v566_v26 = vpop.f32.mrb[4].mxu1 }
 0x3fa   :  { %v567_v27 = vadd.f32 %v566_v26, %v530_v25  ;;  %v737_v28 = vpop.f32.mrb[5].mxu1 }
 0x3fb   :  { %v569_v29 = vpop.f32.mrb[6].mxu1 }
 0x3fc   :  { %572 = vst [vmem:[#allocation7] sm:$0x1] %v567_v27  ;;  %v738_v30 = vpop.f32.mrb[7].mxu1 }
 0x3fd   :  { %854 = shalt.err (!%p851_p6)
}
 0x3fe   :  { %s855_s11 = scalar_lea.hbm %s975_s2, 16 }
 0x3ff   :  { %p856_p7 = scmp.ne.s32.totalorder %s975_s2, %s855_s11  ;;  %p859_p8 = scmp.lt.u32.totalorder %s855_s11, %s975_s2 }
 0x401   :  { %p861_p9 = pnand %p859_p8, %p856_p7 }
 0x403   :  { %864 = shalt.err (!%p861_p9)
}
 0x404   :  { %582 = dma.vmem_to_hbm [thread:$0]  %s580_s6, 16, %s975_s2, [#allocation4]  }
 0x405   :  { %869 = dma.done.wait [#allocation4], 16  }
 0x406   :  { %870 = vsyncadd [#allocation4], 4294967280 }
 0x407   :  { %586 = vsyncpa [#allocation3], 1 }
 0x408   :  { %587 = vsyncpa [#allocation6], 1 }
 0x409   :  { %588 = vsyncpa [#allocation4], 1 }

</bundles_post_ra>
